<compile_context>
chip_gen: v7x
topology: tpu7x:2x2x1
jax: 0.10.0
libtpu: 0.0.40
codegen_flags: <defaults>
</compile_context>

<pallas_src>
import functools

import jax
import jax.numpy as jnp
from jax.experimental import pallas as pl
from jax.experimental.pallas import tpu as pltpu

EPS = 1e-5  # torch GroupNorm default eps


def _round_up(a, b):
    return (a + b - 1) // b * b


# ----------------------------------------------------------------------------
# Kernel
# ----------------------------------------------------------------------------
def _decoder_residual_kernel(x_ref, w1_ref, rep_ref, w2_ref, wo_ref, seg_ref,
                             vec_ref, bo_ref, o_ref):
    x = x_ref[...]                                   # (bn, L) f32
    seg = seg_ref[...]                               # (MLp, MLp) matmul dtype
    b1, g1w, g1b = vec_ref[0:1, :], vec_ref[1:2, :], vec_ref[2:3, :]
    b2, g2w, g2b = vec_ref[3:4, :], vec_ref[4:5, :], vec_ref[5:6, :]

    cdt = w1_ref.dtype                               # matmul operand dtype (f32 or bf16)

    def mm(a, b):
        return jnp.dot(a.astype(cdt), b, preferred_element_type=jnp.float32)

    def group_norm(h, gamma, beta):
        # Per-mode GroupNorm(1, L): mean and E[h^2] via two independent
        # block-diagonal averaging matmuls (MXU pipelines them back-to-back).
        mean = mm(h, seg)
        meansq = mm(h * h, seg)
        var = jnp.maximum(meansq - mean * mean, 0.0)  # clamp: cancellation safety
        scale = jax.lax.rsqrt(var + EPS) * gamma      # fold gamma into the scale
        return (h - mean) * scale + beta

    # Replicate x across mode blocks once (tiny MXU pass); pad lanes stay 0.
    x_rep = mm(x, rep_ref[...])                       # (bn, MLp)

    # Linear1 over all modes at once: (bn, L) @ (L, M*L) -- no input replication.
    h = mm(x, w1_ref[...]) + b1
    h = jnp.maximum(group_norm(h, g1w, g1b), 0.0)
    # Linear2 (block-diagonal), GroupNorm2, residual, ReLU.
    h = mm(h, w2_ref[...]) + b2
    h = jnp.maximum(group_norm(h, g2w, g2b) + x_rep, 0.0)
    # Output FC (block-diagonal) -> lane-dense (bn, MOp) slab, unmasked stores.
    o_ref[...] = mm(h, wo_ref[...]) + bo_ref[...]


# ----------------------------------------------------------------------------
# Wrapper (parameter packing + tiling)
# ----------------------------------------------------------------------------
def _block_diag(w, n_rows, n_cols):
    """(M, I, O) per-mode matrices -> (n_rows, n_cols) zero-padded block-diag."""
    M, I, O = w.shape
    out = jnp.zeros((n_rows, n_cols), w.dtype)
    for m in range(M):
        out = out.at[m * I:(m + 1) * I, m * O:(m + 1) * O].set(w[m])
    return out


def _flat_pad(v, width):
    flat = v.reshape(-1)
    return jnp.zeros((width,), v.dtype).at[:flat.shape[0]].set(flat)


@functools.partial(jax.jit, static_argnames=("use_bf16_matmul",))
def decoder_residual_forward(decoder_in, params, use_bf16_matmul=True):
    """Eval-mode DecoderResidual forward.

    decoder_in: (N, L) float32
    params: dict of per-mode stacked parameters (leading dim = num_modes M)
    returns: (N, M, num_preds * 2) float32
    """
    N, L = decoder_in.shape
    M = params["w1"].shape[0]
    O = params["wo"].shape[-1]
    ML, MO = M * L, M * O
    # Pad packed lane widths to multiples of 256: full vregs, unmasked stores,
    # exact 256-wide MXU tiles on v6e/v7x (2 full 128-wide tiles on v5e).
    MLp = _round_up(ML, 256)
    MOp = _round_up(MO, 256)

    w_dt = jnp.bfloat16 if use_bf16_matmul else jnp.float32

    # --- parameter packing (tiny; traced once under jit) ---------------------
    # Linear1: every mode consumes the same input -> one dense (L, M*L) weight.
    w1c = jnp.zeros((L, MLp), jnp.float32).at[:, :ML].set(
        jnp.transpose(params["w1"], (1, 0, 2)).reshape(L, ML))
    # Residual replicator: identity stacked per mode (zeros in the lane pad).
    rep = jnp.zeros((L, MLp), jnp.float32).at[:, :ML].set(
        jnp.tile(jnp.eye(L, dtype=jnp.float32), (1, M)))
    w2 = _block_diag(params["w2"], MLp, MLp)
    wo = _block_diag(params["wo"], MLp, MOp)
    seg = _block_diag(jnp.full((M, L, L), 1.0 / L, jnp.float32), MLp, MLp)
    w1c, rep, w2, wo, seg = (a.astype(w_dt) for a in (w1c, rep, w2, wo, seg))

    # Seven small vector params packed into one resident slab (+ bo).
    vecs = jnp.stack([_flat_pad(params[k], MLp)
                      for k in ("b1", "g1w", "g1b", "b2", "g2w", "g2b")]
                     + [jnp.zeros((MLp,), jnp.float32)] * 2)        # (8, MLp) f32
    bo = _flat_pad(params["bo"], MOp).reshape(1, MOp)               # (1, MOp) f32

    # --- row tiling: >=2 parallel grid steps when possible (v7x megacore); ---
    # --- tile capped so the (bn, MLp) f32 intermediates stay VMEM-friendly. --
    Np8 = _round_up(max(N, 8), 8)
    bn0 = min(1024, _round_up(pl.cdiv(Np8, 2), 8))
    grid_n = pl.cdiv(Np8, bn0)
    bn = _round_up(pl.cdiv(Np8, grid_n), 8)
    Np = bn * grid_n
    x_p = jnp.zeros((Np, L), jnp.float32).at[:N].set(decoder_in)

    row_spec = lambda shape: pl.BlockSpec(shape, lambda i: (i, 0))   # row-tiled
    fix_spec = lambda shape: pl.BlockSpec(shape, lambda i: (0, 0))   # resident

    out_slab = pl.pallas_call(
        _decoder_residual_kernel,
        out_shape=jax.ShapeDtypeStruct((Np, MOp), jnp.float32),
        grid=(grid_n,),
        in_specs=[
            row_spec((bn, L)),       # x (rows tiled, NOT mode-replicated)
            fix_spec((L, MLp)),      # w1 concatenated
            fix_spec((L, MLp)),      # residual replicator (stacked identities)
            fix_spec((MLp, MLp)),    # w2 block-diag
            fix_spec((MLp, MOp)),    # output_fc block-diag
            fix_spec((MLp, MLp)),    # GroupNorm block-diag averaging matrix
            fix_spec((8, MLp)),      # packed b1/g1w/g1b/b2/g2w/g2b
            fix_spec((1, MOp)),      # bo
        ],
        out_specs=row_spec((bn, MOp)),
        compiler_params=pltpu.CompilerParams(
            dimension_semantics=("parallel",),
            vmem_limit_bytes=32 * 1024 * 1024),
    )(x_p, w1c, rep, w2, wo, seg, vecs, bo)

    # Slab columns are [mode0 | mode1 | ... | zero-pad]; slice + reshape gives
    # exactly torch.stack(...).swapaxes(0, 1).
    return out_slab[:N, :MO].reshape(N, M, O)


# ----------------------------------------------------------------------------
# Pure-JAX reference + synthetic parameters (verification only)
# ----------------------------------------------------------------------------
def _reference_forward(decoder_in, params):
    def one_mode(m):
        x = decoder_in
        def gn(h, gamma, beta):
            mean = jnp.mean(h, axis=-1, keepdims=True)
            var = jnp.mean(jnp.square(h - mean), axis=-1, keepdims=True)
            return (h - mean) / jnp.sqrt(var + EPS) * gamma + beta
        h = x @ params["w1"][m] + params["b1"][m, 0]
        h = jnp.maximum(gn(h, params["g1w"][m, 0], params["g1b"][m, 0]), 0.0)
        h = h @ params["w2"][m] + params["b2"][m, 0]
        h = gn(h, params["g2w"][m, 0], params["g2b"][m, 0]) + x
        h = jnp.maximum(h, 0.0)
        return h @ params["wo"][m] + params["bo"][m, 0]
    stacked = jnp.stack([one_mode(m) for m in range(params["w1"].shape[0])])
    return jnp.swapaxes(stacked, 0, 1)


def make_params(key, num_modes, latent_size, num_preds):
    """Deterministic synthetic parameters (shapes match PredictionNet.__init__)."""
    L, O = latent_size, num_preds * 2
    ks = jax.random.split(key, 6)
    scale = 1.0 / jnp.sqrt(jnp.float32(L))
    return {
        # Linear weights stored (in, out); torch keeps (out, in) — same math via x @ W.
        "w1": jax.random.uniform(ks[0], (num_modes, L, L), jnp.float32, -scale, scale),
        "b1": jax.random.uniform(ks[1], (num_modes, 1, L), jnp.float32, -scale, scale),
        "g1w": jnp.ones((num_modes, 1, L), jnp.float32),
        "g1b": jnp.zeros((num_modes, 1, L), jnp.float32),
        "w2": jax.random.uniform(ks[2], (num_modes, L, L), jnp.float32, -scale, scale),
        "b2": jax.random.uniform(ks[3], (num_modes, 1, L), jnp.float32, -scale, scale),
        "g2w": jnp.ones((num_modes, 1, L), jnp.float32),
        "g2b": jnp.zeros((num_modes, 1, L), jnp.float32),
        "wo": jax.random.uniform(ks[4], (num_modes, L, O), jnp.float32, -scale, scale),
        "bo": jax.random.uniform(ks[5], (num_modes, 1, O), jnp.float32, -scale, scale),
    }


if __name__ == "__main__":
    # latent_size=32, num_preds=16 (-> 32 outputs), mod_steps=[1,5] -> 6 modes, 8 agents.
    latent_size = 32
    num_preds = 16
    mod_steps = [1, 5]
    num_modes = sum(mod_steps)
    num_agents = 8

    key = jax.random.PRNGKey(0)
    k_in, k_params = jax.random.split(key)
    decoder_in = jax.random.normal(k_in, (num_agents, latent_size), jnp.float32)
    params = make_params(k_params, num_modes, latent_size, num_preds)

    ref = _reference_forward(decoder_in, params)

    # Exact-semantics path (f32 matmul operands) — matches torch at tight tol.
    out_f32 = jax.block_until_ready(
        decoder_residual_forward(decoder_in, params, use_bf16_matmul=False))
    assert out_f32.shape == (num_agents, num_modes, num_preds * 2), out_f32.shape
    assert jnp.allclose(out_f32, ref, rtol=1e-4, atol=1e-4), "f32 mismatch vs reference"

    # Fast path (default): bf16 MXU operands, f32 accumulation (v5e/v6e/v7x win).
    out_bf16 = jax.block_until_ready(decoder_residual_forward(decoder_in, params))
    assert out_bf16.shape == (num_agents, num_modes, num_preds * 2), out_bf16.shape
    assert jnp.allclose(out_bf16, ref, rtol=5e-2, atol=5e-2), "bf16 mismatch vs reference"

    print("KERNEL_OK")
</pallas_src>

<mosaic_0001>
module attributes {stable_mosaic.version = 11 : i64} {
  func.func @_decoder_residual_kernel(%arg0: i32, %arg1: memref<8x32xf32, #tpu.memory_space<vmem>>, %arg2: memref<32x256xf32, #tpu.memory_space<vmem>>, %arg3: memref<32x256xf32, #tpu.memory_space<vmem>>, %arg4: memref<256x256xf32, #tpu.memory_space<vmem>>, %arg5: memref<256x256xf32, #tpu.memory_space<vmem>>, %arg6: memref<256x256xf32, #tpu.memory_space<vmem>>, %arg7: memref<8x256xf32, #tpu.memory_space<vmem>>, %arg8: memref<1x256xf32, #tpu.memory_space<vmem>>, %arg9: memref<8x256xf32, #tpu.memory_space<vmem>>) attributes {dimension_semantics = [#tpu.dimension_semantics<parallel>], iteration_bounds = array<i64: 1>, scalar_prefetch = 0 : i64, scratch_operands = 0 : i64, tpu.core_type = #tpu.core_type<tc>, window_params = [{transform_indices = @transform_0, window_bounds = array<i64: 8, 32>}, {pipeline_mode = #tpu.pipeline_mode<synchronous>, transform_indices = @transform_1, window_bounds = array<i64: 32, 256>}, {pipeline_mode = #tpu.pipeline_mode<synchronous>, transform_indices = @transform_2, window_bounds = array<i64: 32, 256>}, {pipeline_mode = #tpu.pipeline_mode<synchronous>, transform_indices = @transform_3, window_bounds = array<i64: 256, 256>}, {pipeline_mode = #tpu.pipeline_mode<synchronous>, transform_indices = @transform_4, window_bounds = array<i64: 256, 256>}, {pipeline_mode = #tpu.pipeline_mode<synchronous>, transform_indices = @transform_5, window_bounds = array<i64: 256, 256>}, {pipeline_mode = #tpu.pipeline_mode<synchronous>, transform_indices = @transform_6, window_bounds = array<i64: 8, 256>}, {pipeline_mode = #tpu.pipeline_mode<synchronous>, transform_indices = @transform_7, window_bounds = array<i64: 1, 256>}, {transform_indices = @transform_8, window_bounds = array<i64: 8, 256>}]} {
    %c0 = arith.constant 0 : index
    %c0_0 = arith.constant 0 : index
    %0 = vector.load %arg1[%c0, %c0_0] : memref<8x32xf32, #tpu.memory_space<vmem>>, vector<8x32xf32>
    %c0_1 = arith.constant 0 : index
    %c0_2 = arith.constant 0 : index
    %1 = vector.load %arg6[%c0_1, %c0_2] : memref<256x256xf32, #tpu.memory_space<vmem>>, vector<256x256xf32>
    %c0_3 = arith.constant 0 : index
    %c0_4 = arith.constant 0 : index
    %2 = vector.load %arg7[%c0_3, %c0_4] : memref<8x256xf32, #tpu.memory_space<vmem>>, vector<1x256xf32>
    %c1 = arith.constant 1 : index
    %c0_5 = arith.constant 0 : index
    %3 = vector.load %arg7[%c1, %c0_5] : memref<8x256xf32, #tpu.memory_space<vmem>>, vector<1x256xf32>
    %c2 = arith.constant 2 : index
    %c0_6 = arith.constant 0 : index
    %4 = vector.load %arg7[%c2, %c0_6] : memref<8x256xf32, #tpu.memory_space<vmem>>, vector<1x256xf32>
    %c3 = arith.constant 3 : index
    %c0_7 = arith.constant 0 : index
    %5 = vector.load %arg7[%c3, %c0_7] : memref<8x256xf32, #tpu.memory_space<vmem>>, vector<1x256xf32>
    %c4 = arith.constant 4 : index
    %c0_8 = arith.constant 0 : index
    %6 = vector.load %arg7[%c4, %c0_8] : memref<8x256xf32, #tpu.memory_space<vmem>>, vector<1x256xf32>
    %c5 = arith.constant 5 : index
    %c0_9 = arith.constant 0 : index
    %7 = vector.load %arg7[%c5, %c0_9] : memref<8x256xf32, #tpu.memory_space<vmem>>, vector<1x256xf32>
    %c0_10 = arith.constant 0 : index
    %c0_11 = arith.constant 0 : index
    %8 = vector.load %arg3[%c0_10, %c0_11] : memref<32x256xf32, #tpu.memory_space<vmem>>, vector<32x256xf32>
    %cst = arith.constant dense<0.000000e+00> : vector<8x256xf32>
    %9 = tpu.matmul %0, %8, %cst {dimension_numbers = #tpu.dot_dimension_numbers<[1], [0], [0], [1], [0, 0, 1, 1], [], []>} : vector<8x32xf32>, vector<32x256xf32>, vector<8x256xf32> -> vector<8x256xf32>
    %c0_12 = arith.constant 0 : index
    %c0_13 = arith.constant 0 : index
    %10 = vector.load %arg2[%c0_12, %c0_13] : memref<32x256xf32, #tpu.memory_space<vmem>>, vector<32x256xf32>
    %cst_14 = arith.constant dense<0.000000e+00> : vector<8x256xf32>
    %11 = tpu.matmul %0, %10, %cst_14 {dimension_numbers = #tpu.dot_dimension_numbers<[1], [0], [0], [1], [0, 0, 1, 1], [], []>} : vector<8x32xf32>, vector<32x256xf32>, vector<8x256xf32> -> vector<8x256xf32>
    %12 = vector.broadcast %2 : vector<1x256xf32> to vector<8x256xf32>
    %13 = arith.addf %11, %12 : vector<8x256xf32>
    %cst_15 = arith.constant dense<0.000000e+00> : vector<8x256xf32>
    %14 = tpu.matmul %13, %1, %cst_15 {dimension_numbers = #tpu.dot_dimension_numbers<[1], [0], [0], [1], [0, 0, 1, 1], [], []>} : vector<8x256xf32>, vector<256x256xf32>, vector<8x256xf32> -> vector<8x256xf32>
    %15 = arith.mulf %13, %13 : vector<8x256xf32>
    %cst_16 = arith.constant dense<0.000000e+00> : vector<8x256xf32>
    %16 = tpu.matmul %15, %1, %cst_16 {dimension_numbers = #tpu.dot_dimension_numbers<[1], [0], [0], [1], [0, 0, 1, 1], [], []>} : vector<8x256xf32>, vector<256x256xf32>, vector<8x256xf32> -> vector<8x256xf32>
    %17 = arith.mulf %14, %14 : vector<8x256xf32>
    %18 = arith.subf %16, %17 : vector<8x256xf32>
    %cst_17 = arith.constant 0.000000e+00 : f32
    %19 = vector.broadcast %cst_17 : f32 to vector<8x256xf32>
    %20 = arith.maximumf %18, %19 : vector<8x256xf32>
    %cst_18 = arith.constant 9.99999974E-6 : f32
    %21 = vector.broadcast %cst_18 : f32 to vector<8x256xf32>
    %22 = arith.addf %20, %21 : vector<8x256xf32>
    %23 = math.rsqrt %22 : vector<8x256xf32>
    %24 = vector.broadcast %3 : vector<1x256xf32> to vector<8x256xf32>
    %25 = arith.mulf %23, %24 : vector<8x256xf32>
    %26 = arith.subf %13, %14 : vector<8x256xf32>
    %27 = arith.mulf %26, %25 : vector<8x256xf32>
    %28 = vector.broadcast %4 : vector<1x256xf32> to vector<8x256xf32>
    %29 = arith.addf %27, %28 : vector<8x256xf32>
    %cst_19 = arith.constant 0.000000e+00 : f32
    %30 = vector.broadcast %cst_19 : f32 to vector<8x256xf32>
    %31 = arith.maximumf %29, %30 : vector<8x256xf32>
    %c0_20 = arith.constant 0 : index
    %c0_21 = arith.constant 0 : index
    %32 = vector.load %arg4[%c0_20, %c0_21] : memref<256x256xf32, #tpu.memory_space<vmem>>, vector<256x256xf32>
    %cst_22 = arith.constant dense<0.000000e+00> : vector<8x256xf32>
    %33 = tpu.matmul %31, %32, %cst_22 {dimension_numbers = #tpu.dot_dimension_numbers<[1], [0], [0], [1], [0, 0, 1, 1], [], []>} : vector<8x256xf32>, vector<256x256xf32>, vector<8x256xf32> -> vector<8x256xf32>
    %34 = vector.broadcast %5 : vector<1x256xf32> to vector<8x256xf32>
    %35 = arith.addf %33, %34 : vector<8x256xf32>
    %cst_23 = arith.constant dense<0.000000e+00> : vector<8x256xf32>
    %36 = tpu.matmul %35, %1, %cst_23 {dimension_numbers = #tpu.dot_dimension_numbers<[1], [0], [0], [1], [0, 0, 1, 1], [], []>} : vector<8x256xf32>, vector<256x256xf32>, vector<8x256xf32> -> vector<8x256xf32>
    %37 = arith.mulf %35, %35 : vector<8x256xf32>
    %cst_24 = arith.constant dense<0.000000e+00> : vector<8x256xf32>
    %38 = tpu.matmul %37, %1, %cst_24 {dimension_numbers = #tpu.dot_dimension_numbers<[1], [0], [0], [1], [0, 0, 1, 1], [], []>} : vector<8x256xf32>, vector<256x256xf32>, vector<8x256xf32> -> vector<8x256xf32>
    %39 = arith.mulf %36, %36 : vector<8x256xf32>
    %40 = arith.subf %38, %39 : vector<8x256xf32>
    %cst_25 = arith.constant 0.000000e+00 : f32
    %41 = vector.broadcast %cst_25 : f32 to vector<8x256xf32>
    %42 = arith.maximumf %40, %41 : vector<8x256xf32>
    %cst_26 = arith.constant 9.99999974E-6 : f32
    %43 = vector.broadcast %cst_26 : f32 to vector<8x256xf32>
    %44 = arith.addf %42, %43 : vector<8x256xf32>
    %45 = math.rsqrt %44 : vector<8x256xf32>
    %46 = vector.broadcast %6 : vector<1x256xf32> to vector<8x256xf32>
    %47 = arith.mulf %45, %46 : vector<8x256xf32>
    %48 = arith.subf %35, %36 : vector<8x256xf32>
    %49 = arith.mulf %48, %47 : vector<8x256xf32>
    %50 = vector.broadcast %7 : vector<1x256xf32> to vector<8x256xf32>
    %51 = arith.addf %49, %50 : vector<8x256xf32>
    %52 = arith.addf %51, %9 : vector<8x256xf32>
    %cst_27 = arith.constant 0.000000e+00 : f32
    %53 = vector.broadcast %cst_27 : f32 to vector<8x256xf32>
    %54 = arith.maximumf %52, %53 : vector<8x256xf32>
    %c0_28 = arith.constant 0 : index
    %c0_29 = arith.constant 0 : index
    %55 = vector.load %arg5[%c0_28, %c0_29] : memref<256x256xf32, #tpu.memory_space<vmem>>, vector<256x256xf32>
    %cst_30 = arith.constant dense<0.000000e+00> : vector<8x256xf32>
    %56 = tpu.matmul %54, %55, %cst_30 {dimension_numbers = #tpu.dot_dimension_numbers<[1], [0], [0], [1], [0, 0, 1, 1], [], []>} : vector<8x256xf32>, vector<256x256xf32>, vector<8x256xf32> -> vector<8x256xf32>
    %c0_31 = arith.constant 0 : index
    %c0_32 = arith.constant 0 : index
    %57 = vector.load %arg8[%c0_31, %c0_32] : memref<1x256xf32, #tpu.memory_space<vmem>>, vector<1x256xf32>
    %58 = vector.broadcast %57 : vector<1x256xf32> to vector<8x256xf32>
    %59 = arith.addf %56, %58 : vector<8x256xf32>
    %c0_33 = arith.constant 0 : index
    %c0_34 = arith.constant 0 : index
    %60 = vector.load %arg9[%c0_33, %c0_34] : memref<8x256xf32, #tpu.memory_space<vmem>>, vector<8x256xf32>
    tpu.vector_store %arg9[%c0_33, %c0_34], %59 {strides = array<i32>} : memref<8x256xf32, #tpu.memory_space<vmem>>, vector<8x256xf32>,
    return
  }
  func.func @transform_0(%arg0: i32) -> (i32, i32) {
    %c0_i32 = arith.constant 0 : i32
    %c0_i32_0 = arith.constant 0 : i32
    return %arg0, %c0_i32 : i32, i32
  }
  func.func @transform_1(%arg0: i32) -> (i32, i32) {
    %c0_i32 = arith.constant 0 : i32
    %c0_i32_0 = arith.constant 0 : i32
    %c0_i32_1 = arith.constant 0 : i32
    return %c0_i32, %c0_i32_0 : i32, i32
  }
  func.func @transform_2(%arg0: i32) -> (i32, i32) {
    %c0_i32 = arith.constant 0 : i32
    %c0_i32_0 = arith.constant 0 : i32
    %c0_i32_1 = arith.constant 0 : i32
    return %c0_i32, %c0_i32_0 : i32, i32
  }
  func.func @transform_3(%arg0: i32) -> (i32, i32) {
    %c0_i32 = arith.constant 0 : i32
    %c0_i32_0 = arith.constant 0 : i32
    %c0_i32_1 = arith.constant 0 : i32
    return %c0_i32, %c0_i32_0 : i32, i32
  }
  func.func @transform_4(%arg0: i32) -> (i32, i32) {
    %c0_i32 = arith.constant 0 : i32
    %c0_i32_0 = arith.constant 0 : i32
    %c0_i32_1 = arith.constant 0 : i32
    return %c0_i32, %c0_i32_0 : i32, i32
  }
  func.func @transform_5(%arg0: i32) -> (i32, i32) {
    %c0_i32 = arith.constant 0 : i32
    %c0_i32_0 = arith.constant 0 : i32
    %c0_i32_1 = arith.constant 0 : i32
    return %c0_i32, %c0_i32_0 : i32, i32
  }
  func.func @transform_6(%arg0: i32) -> (i32, i32) {
    %c0_i32 = arith.constant 0 : i32
    %c0_i32_0 = arith.constant 0 : i32
    %c0_i32_1 = arith.constant 0 : i32
    return %c0_i32, %c0_i32_0 : i32, i32
  }
  func.func @transform_7(%arg0: i32) -> (i32, i32) {
    %c0_i32 = arith.constant 0 : i32
    %c0_i32_0 = arith.constant 0 : i32
    %c0_i32_1 = arith.constant 0 : i32
    return %c0_i32, %c0_i32_0 : i32, i32
  }
  func.func @transform_8(%arg0: i32) -> (i32, i32) {
    %c0_i32 = arith.constant 0 : i32
    %c0_i32_0 = arith.constant 0 : i32
    return %arg0, %c0_i32 : i32, i32
  }
}

</mosaic_0001>

<bundles_post_ra>
// kernel: decoder_residual_forward.1
= control target key start
LH: loop header
LB: loop body
LE: loop exit
PB: predicated region body
PF: predicated region fallthrough
CT: control target
= control target key end

     0   :  { %v1367_v3 = vmov 0.0   ;;  %vm113_vm0 = vcmask 261120   ;;  %s2309_s1 = inlined_call_operand.vmem [shape: f32[32,256], index: 1, kind: input, shape index: {}]   ;;  %s2310_s2 = inlined_call_operand.vmem [shape: f32[32,256], index: 2, kind: input, shape index: {}]   ;;  %s2311_s5 = inlined_call_operand.vmem [shape: f32[256,256], index: 5, kind: input, shape index: {}]   ;;  %s2312_s0 = inlined_call_operand.vmem [shape: f32[8,32], index: 0, kind: input, shape index: {}]   ;;  %s2313_s3 = inlined_call_operand.vmem [shape: f32[256,256], index: 3, kind: input, shape index: {}]   ;;  %s2314_s6 = inlined_call_operand.vmem [shape: f32[8,256], index: 6, kind: input, shape index: {}]   ;;  %s2315_s4 = inlined_call_operand.vmem [shape: f32[256,256], index: 4, kind: input, shape index: {}]   ;;  %s2316_s7 = inlined_call_operand.vmem [shape: f32[1,256], index: 7, kind: input, shape index: {}]   ;;  %s2317_s8 = inlined_call_operand.vmem [shape: f32[8,256], index: 8, kind: output, shape index: {}]  }
   0x1   :  { %v189_v0 = vld [vmem:[%s2309_s1 + $0x8] sm:$0xff]  ;;  %v191_v1 = vld [vmem:[%s2309_s1 + $0x18] sm:$0xff]  ;;  %v188_v2 = vld [vmem:[%s2309_s1] sm:$0xff]  ;;  %271 = vmatprep.mubr.f32.mxu1 %v1367_v3  ;;  %181 = vmatprep.mubr.f32.mxu0 %v1367_v3 }
   0x2   :  { %v966_v4 = vpack.c.bf16 %v191_v1, %v189_v0  ;;  %v190_v5 = vld [vmem:[%s2309_s1 + $0x10] sm:$0xff]  ;;  %v193_v6 = vld [vmem:[%s2309_s1 + $0x28] sm:$0xff]  ;;  %v195_v7 = vld [vmem:[%s2309_s1 + $0x38] sm:$0xff] }
   0x3   :  { %v968_v8 = vpack.c.bf16 %v190_v5, %v188_v2  ;;  %v970_v9 = vpack.c.bf16 %v195_v7, %v193_v6  ;;  %v192_v10 = vld [vmem:[%s2309_s1 + $0x20] sm:$0xff]  ;;  %v194_v11 = vld [vmem:[%s2309_s1 + $0x30] sm:$0xff]  ;;  %v106_v12 = vld [vmem:[%s2310_s2 + $0x8] sm:$0xff] }
   0x4   :  { %967 = vmatprep.subr.bf16.mxu1 %v966_v4  ;;  %v108_v13 = vld [vmem:[%s2310_s2 + $0x18] sm:$0xff]  ;;  %v105_v14 = vld [vmem:[%s2310_s2] sm:$0xff]  ;;  %v972_v15 = vpack.c.bf16 %v194_v11, %v192_v10  ;;  %v107_v17 = vld [vmem:[%s2310_s2 + $0x10] sm:$0xff] }
   0x5   :  { %969 = vmatpush1.bf16.msra.mxu1 %v968_v8  ;;  %v958_v16 = vpack.c.bf16 %v108_v13, %v106_v12  ;;  %v110_v18 = vld [vmem:[%s2310_s2 + $0x28] sm:$0xff]  ;;  %v112_v19 = vld [vmem:[%s2310_s2 + $0x38] sm:$0xff]  ;;  %v960_v20 = vpack.c.bf16 %v107_v17, %v105_v14  ;;  %v109_v22 = vld [vmem:[%s2310_s2 + $0x20] sm:$0xff] }
   0x6   :  { %971 = vmatprep.subr.bf16.mxu1 %v970_v9  ;;  %v962_v21 = vpack.c.bf16 %v112_v19, %v110_v18  ;;  %v111_v23 = vld [vmem:[%s2310_s2 + $0x30] sm:$0xff]  ;;  %v31_v24 = vld [vmem:[%s2311_s5 + $0x8] sm:$0xff]  ;;  %v33_v25 = vld [vmem:[%s2311_s5 + $0x18] sm:$0xff] }
   0x7   :  { %959 = vmatprep.subr.bf16.mxu0 %v958_v16  ;;  %v964_v26 = vpack.c.bf16 %v111_v23, %v109_v22  ;;  %v1467_v27 = vpack.c.bf16 %v33_v25, %v31_v24  ;;  %v30_v28 = vld [vmem:[%s2311_s5] sm:$0xff]  ;;  %v32_v29 = vld [vmem:[%s2311_s5 + $0x10] sm:$0xff]  ;;  %v35_v31 = vld [vmem:[%s2311_s5 + $0x28] sm:$0xff] }
   0x8   :  { %961 = vmatpush1.bf16.msra.mxu0 %v960_v20  ;;  %v29_v30 = vld [vmem:[%s2312_s0] sm:$0xff]  ;;  %v37_v32 = vld [vmem:[%s2311_s5 + $0x38] sm:$0xff]  ;;  %v1485_v33 = vpack.c.bf16 %v32_v29, %v30_v28  ;;  %v36_v36 = vld [vmem:[%s2311_s5 + $0x30] sm:$0xff] }
   0x9   :  { %973 = vmatpush1.bf16.msra.mxu1 %v972_v15  ;;  %963 = vmatprep.subr.bf16.mxu0 %v962_v21  ;;  %v1488_v34 = vpack.c.bf16 %v37_v32, %v35_v31  ;;  %v34_v35 = vld [vmem:[%s2311_s5 + $0x20] sm:$0xff]  ;;  %v39_v37 = vld [vmem:[%s2311_s5 + $0x48] sm:$0xff]  ;;  %v41_v38 = vld [vmem:[%s2311_s5 + $0x58] sm:$0xff] }
   0xa   :  { %1039 = vmatprep.subr.bf16.mxu1 %v1467_v27  ;;  %v1506_v39 = vpack.c.bf16 %v36_v36, %v34_v35  ;;  %v1509_v40 = vpack.c.bf16 %v41_v38, %v39_v37  ;;  %v38_v41 = vld [vmem:[%s2311_s5 + $0x40] sm:$0xff]  ;;  %v40_v42 = vld [vmem:[%s2311_s5 + $0x50] sm:$0xff]  ;;  %v43_v43 = vld [vmem:[%s2311_s5 + $0x68] sm:$0xff] }
   0xb   :  { %v45_v44 = vld [vmem:[%s2311_s5 + $0x78] sm:$0xff]  ;;  %v1526_v45 = vpack.c.bf16 %v40_v42, %v38_v41  ;;  %v42_v47 = vld [vmem:[%s2311_s5 + $0x60] sm:$0xff]  ;;  %v44_v48 = vld [vmem:[%s2311_s5 + $0x70] sm:$0xff] }
   0xc   :  { %957 = vmatmul.mubr.msk.f32.vlgmr.msra.gmra.mrb[0].mxu1 %vm113_vm0, %v29_v30  ;;  %965 = vmatpush1.bf16.msra.mxu0 %v964_v26  ;;  %v1529_v46 = vpack.c.bf16 %v45_v44, %v43_v43  ;;  %v47_v49 = vld [vmem:[%s2311_s5 + $0x88] sm:$0xff]  ;;  %v49_v50 = vld [vmem:[%s2311_s5 + $0x98] sm:$0xff]  ;;  %v1546_v51 = vpack.c.bf16 %v44_v48, %v42_v47  ;;  %v46_v53 = vld [vmem:[%s2311_s5 + $0x80] sm:$0xff] }
   0xd   :  { %975 = vmatprep.subr.bf16.mxu0 %v1467_v27  ;;  %1041 = vmatpush1.bf16.msra.mxu1 %v1485_v33  ;;  %v1549_v52 = vpack.c.bf16 %v49_v50, %v47_v49  ;;  %v48_v54 = vld [vmem:[%s2311_s5 + $0x90] sm:$0xff]  ;;  %v51_v55 = vld [vmem:[%s2311_s5 + $0xa8] sm:$0xff]  ;;  %v53_v56 = vld [vmem:[%s2311_s5 + $0xb8] sm:$0xff] }
   0xe   :  { %1043 = vmatprep.subr.bf16.mxu1 %v1488_v34  ;;  %v1566_v57 = vpack.c.bf16 %v48_v54, %v46_v53  ;;  %v1569_v58 = vpack.c.bf16 %v53_v56, %v51_v55  ;;  %v50_v59 = vld [vmem:[%s2311_s5 + $0xa0] sm:$0xff]  ;;  %v52_v60 = vld [vmem:[%s2311_s5 + $0xb0] sm:$0xff]  ;;  %v55_v61 = vld [vmem:[%s2311_s5 + $0xc8] sm:$0xff] }
   0xf   :  { %956 = vmatmul.mubr.msk.f32.vlgmr.msra.gmra.mrb[0].mxu0 %vm113_vm0, %v29_v30  ;;  %v57_v62 = vld [vmem:[%s2311_s5 + $0xd8] sm:$0xff]  ;;  %v1586_v63 = vpack.c.bf16 %v52_v60, %v50_v59  ;;  %v54_v1 = vld [vmem:[%s2311_s5 + $0xc0] sm:$0xff]  ;;  %v56_v2 = vld [vmem:[%s2311_s5 + $0xd0] sm:$0xff] }
  0x10   :  { %977 = vmatpush1.bf16.msra.mxu0 %v1485_v33  ;;  %v1589_v0 = vpack.c.bf16 %v57_v62, %v55_v61  ;;  %v59_v3 = vld [vmem:[%s2311_s5 + $0xe8] sm:$0xff]  ;;  %v61_v4 = vld [vmem:[%s2311_s5 + $0xf8] sm:$0xff]  ;;  %v1606_v5 = vpack.c.bf16 %v56_v2, %v54_v1  ;;  %v58_v7 = vld [vmem:[%s2311_s5 + $0xe0] sm:$0xff] }
  0x11   :  { %979 = vmatprep.subr.bf16.mxu0 %v1488_v34  ;;  %1045 = vmatpush1.bf16.msra.mxu1 %v1506_v39  ;;  %v1609_v6 = vpack.c.bf16 %v61_v4, %v59_v3  ;;  %v60_v8 = vld [vmem:[%s2311_s5 + $0xf0] sm:$0xff]  ;;  %v63_v9 = vld [vmem:[%s2311_s5 + $0x108] sm:$0xff]  ;;  %v65_v10 = vld [vmem:[%s2311_s5 + $0x118] sm:$0xff] }
  0x12   :  { %1047 = vmatprep.subr.bf16.mxu1 %v1509_v40  ;;  %v1626_v11 = vpack.c.bf16 %v60_v8, %v58_v7  ;;  %v1629_v12 = vpack.c.bf16 %v65_v10, %v63_v9  ;;  %v62_v13 = vld [vmem:[%s2311_s5 + $0x100] sm:$0xff]  ;;  %v64_v14 = vld [vmem:[%s2311_s5 + $0x110] sm:$0xff]  ;;  %v67_v15 = vld [vmem:[%s2311_s5 + $0x128] sm:$0xff] }
  0x13   :  { %v69_v16 = vld [vmem:[%s2311_s5 + $0x138] sm:$0xff]  ;;  %v1646_v17 = vpack.c.bf16 %v64_v14, %v62_v13  ;;  %v66_v19 = vld [vmem:[%s2311_s5 + $0x120] sm:$0xff]  ;;  %v68_v20 = vld [vmem:[%s2311_s5 + $0x130] sm:$0xff]  ;;  %v197_v14 = vlaneseq }
  0x14   :  { %981 = vmatpush1.bf16.msra.mxu0 %v1506_v39  ;;  %v1649_v18 = vpack.c.bf16 %v69_v16, %v67_v15  ;;  %v71_v21 = vld [vmem:[%s2311_s5 + $0x148] sm:$0xff]  ;;  %v73_v22 = vld [vmem:[%s2311_s5 + $0x158] sm:$0xff]  ;;  %v1666_v23 = vpack.c.bf16 %v68_v20, %v66_v19  ;;  %v70_v25 = vld [vmem:[%s2311_s5 + $0x140] sm:$0xff] }
  0x15   :  { %983 = vmatprep.subr.bf16.mxu0 %v1509_v40  ;;  %1049 = vmatpush1.bf16.msra.mxu1 %v1526_v45  ;;  %v1669_v24 = vpack.c.bf16 %v73_v22, %v71_v21  ;;  %v72_v26 = vld [vmem:[%s2311_s5 + $0x150] sm:$0xff]  ;;  %v75_v28 = vld [vmem:[%s2311_s5 + $0x168] sm:$0xff]  ;;  %v77_v29 = vld [vmem:[%s2311_s5 + $0x178] sm:$0xff]  ;;  %v198_v15 = vshrl.u32 %v197_v14, 7 }
  0x16   :  { %1051 = vmatprep.subr.bf16.mxu1 %v1529_v46  ;;  %v1686_v30 = vpack.c.bf16 %v72_v26, %v70_v25  ;;  %v1689_v31 = vpack.c.bf16 %v77_v29, %v75_v28  ;;  %v74_v32 = vld [vmem:[%s2311_s5 + $0x160] sm:$0xff]  ;;  %v76_v35 = vld [vmem:[%s2311_s5 + $0x170] sm:$0xff]  ;;  %v79_v36 = vld [vmem:[%s2311_s5 + $0x188] sm:$0xff] }
  0x17   :  { %v81_v37 = vld [vmem:[%s2311_s5 + $0x198] sm:$0xff]  ;;  %v1706_v38 = vpack.c.bf16 %v76_v35, %v74_v32  ;;  %v78_v42 = vld [vmem:[%s2311_s5 + $0x180] sm:$0xff]  ;;  %v80_v43 = vld [vmem:[%s2311_s5 + $0x190] sm:$0xff]  ;;  %v1793_v16 = vsub.s32 0, %v198_v15  ;;  %v1798_v20 = vsub.s32 1, %v198_v15 }
  0x18   :  { %985 = vmatpush1.bf16.msra.mxu0 %v1526_v45  ;;  %v1709_v41 = vpack.c.bf16 %v81_v37, %v79_v36  ;;  %v83_v44 = vld [vmem:[%s2311_s5 + $0x1a8] sm:$0xff]  ;;  %v85_v47 = vld [vmem:[%s2311_s5 + $0x1b8] sm:$0xff]  ;;  %v1726_v48 = vpack.c.bf16 %v80_v43, %v78_v42  ;;  %v82_v50 = vld [vmem:[%s2311_s5 + $0x1a0] sm:$0xff] }
  0x19   :  { %987 = vmatprep.subr.bf16.mxu0 %v1529_v46  ;;  %1053 = vmatpush1.bf16.msra.mxu1 %v1546_v51  ;;  %v1729_v49 = vpack.c.bf16 %v85_v47, %v83_v44  ;;  %v84_v53 = vld [vmem:[%s2311_s5 + $0x1b0] sm:$0xff]  ;;  %v87_v54 = vld [vmem:[%s2311_s5 + $0x1c8] sm:$0xff]  ;;  %v89_v55 = vld [vmem:[%s2311_s5 + $0x1d8] sm:$0xff] }
  0x1a   :  { %1055 = vmatprep.subr.bf16.mxu1 %v1549_v52  ;;  %v1746_v56 = vpack.c.bf16 %v84_v53, %v82_v50  ;;  %v1749_v59 = vpack.c.bf16 %v89_v55, %v87_v54  ;;  %v86_v60 = vld [vmem:[%s2311_s5 + $0x1c0] sm:$0xff]  ;;  %v88_v61 = vld [vmem:[%s2311_s5 + $0x1d0] sm:$0xff]  ;;  %v91_v1 = vld [vmem:[%s2311_s5 + $0x1e8] sm:$0xff] }
  0x1b   :  { %v1760_v62 = vpack.c.bf16 %v88_v61, %v86_v60  ;;  %v93_v2 = vld [vmem:[%s2311_s5 + $0x1f8] sm:$0xff]  ;;  %v90_v4 = vld [vmem:[%s2311_s5 + $0x1e0] sm:$0xff]  ;;  %v92_v7 = vld [vmem:[%s2311_s5 + $0x1f0] sm:$0xff] }
  0x1c   :  { %989 = vmatpush1.bf16.msra.mxu0 %v1546_v51  ;;  %v1772_v3 = vpack.c.bf16 %v93_v2, %v91_v1  ;;  %v1780_v8 = vpack.c.bf16 %v92_v7, %v90_v4  ;;  %v465_v9 = vld [vmem:[%s2313_s3 + $0x8] sm:$0xff]  ;;  %v467_v10 = vld [vmem:[%s2313_s3 + $0x18] sm:$0xff]  ;;  %v464_v25 = vld [vmem:[%s2313_s3] sm:$0xff] }
  0x1d   :  { %991 = vmatprep.subr.bf16.mxu0 %v1549_v52  ;;  %1057 = vmatpush1.bf16.msra.mxu1 %v1566_v57  ;;  %v1102_v13 = vpack.c.bf16 %v467_v10, %v465_v9  ;;  %v94_v19 = vld [vmem:[%s2314_s6] ss:$8 sm:$0x3]  ;;  %v466_v26 = vld [vmem:[%s2313_s3 + $0x10] sm:$0xff]  ;;  %v471_v32 = vld [vmem:[%s2313_s3 + $0x38] sm:$0xff] }
  0x1e   :  { %1059 = vmatprep.subr.bf16.mxu1 %v1569_v58  ;;  %v200_v21 = vrot.slane %v94_v19, %v1793_v16  ;;  %v204_v22 = vrot.slane %v94_v19, %v1798_v20  ;;  %v469_v29 = vld [vmem:[%s2313_s3 + $0x28] sm:$0xff]  ;;  %v1104_v42 = vpack.c.bf16 %v466_v26, %v464_v25  ;;  %v468_v47 = vld [vmem:[%s2313_s3 + $0x20] sm:$0xff]  ;;  %v470_v50 = vld [vmem:[%s2313_s3 + $0x30] sm:$0xff] }
  0x1f   :  { %v1106_v44 = vpack.c.bf16 %v471_v32, %v469_v29  ;;  %v473_v55 = vld [vmem:[%s2313_s3 + $0x48] sm:$0xff]  ;;  %v475_v60 = vld [vmem:[%s2313_s3 + $0x58] sm:$0xff]  ;;  %v1108_v1 = vpack.c.bf16 %v470_v50, %v468_v47  ;;  %v472_v4 = vld [vmem:[%s2313_s3 + $0x40] sm:$0xff] }
  0x20   :  { %993 = vmatpush1.bf16.msra.mxu0 %v1566_v57  ;;  %v1110_v2 = vpack.c.bf16 %v475_v60, %v473_v55  ;;  %v474_v7 = vld [vmem:[%s2313_s3 + $0x50] sm:$0xff]  ;;  %v477_v9 = vld [vmem:[%s2313_s3 + $0x68] sm:$0xff]  ;;  %v479_v10 = vld [vmem:[%s2313_s3 + $0x78] sm:$0xff] }
  0x21   :  { %995 = vmatprep.subr.bf16.mxu0 %v1569_v58  ;;  %1061 = vmatpush1.bf16.msra.mxu1 %v1586_v63  ;;  %v1114_v14 = vpack.c.bf16 %v479_v10, %v477_v9  ;;  %v476_v15 = vld [vmem:[%s2313_s3 + $0x60] sm:$0xff]  ;;  %v478_v19 = vld [vmem:[%s2313_s3 + $0x70] sm:$0xff]  ;;  %v485_v32 = vld [vmem:[%s2313_s3 + $0xa8] sm:$0xff] }
  0x22   :  { %1063 = vmatprep.subr.bf16.mxu1 %v1589_v0  ;;  %v1116_v25 = vpack.c.bf16 %v478_v19, %v476_v15  ;;  %v482_v29 = vld [vmem:[%s2313_s3 + $0x90] sm:$0xff]  ;;  %v484_v47 = vld [vmem:[%s2313_s3 + $0xa0] sm:$0xff]  ;;  %v491_v55 = vld [vmem:[%s2313_s3 + $0xd8] sm:$0xff] }
  0x23   :  { %v486_v50 = vld [vmem:[%s2313_s3 + $0xb0] sm:$0xff]  ;;  %v497_v15 = vld [vmem:[%s2313_s3 + $0x108] sm:$0xff]  ;;  %v499_v19 = vld [vmem:[%s2313_s3 + $0x118] sm:$0xff] }
  0x24   :  { %997 = vmatpush1.bf16.msra.mxu0 %v1586_v63  ;;  %v1124_v60 = vpack.c.bf16 %v486_v50, %v484_v47  ;;  %v505_v50 = vld [vmem:[%s2313_s3 + $0x148] sm:$0xff] }
  0x25   :  { %999 = vmatprep.subr.bf16.mxu0 %v1589_v0  ;;  %1065 = vmatpush1.bf16.msra.mxu1 %v1606_v5 }
  0x26   :  { %1067 = vmatprep.subr.bf16.mxu1 %v1609_v6 }
  0x28   :  { %1001 = vmatpush1.bf16.msra.mxu0 %v1606_v5 }
  0x29   :  { %1003 = vmatprep.subr.bf16.mxu0 %v1609_v6  ;;  %1069 = vmatpush1.bf16.msra.mxu1 %v1626_v11 }
  0x2a   :  { %1071 = vmatprep.subr.bf16.mxu1 %v1629_v12 }
  0x2c   :  { %1005 = vmatpush1.bf16.msra.mxu0 %v1626_v11 }
  0x2d   :  { %1007 = vmatprep.subr.bf16.mxu0 %v1629_v12  ;;  %1073 = vmatpush1.bf16.msra.mxu1 %v1646_v17 }
  0x2e   :  { %1075 = vmatprep.subr.bf16.mxu1 %v1649_v18 }
  0x30   :  { %1009 = vmatpush1.bf16.msra.mxu0 %v1646_v17 }
  0x31   :  { %1011 = vmatprep.subr.bf16.mxu0 %v1649_v18  ;;  %1077 = vmatpush1.bf16.msra.mxu1 %v1666_v23 }
  0x32   :  { %1079 = vmatprep.subr.bf16.mxu1 %v1669_v24 }
  0x34   :  { %1013 = vmatpush1.bf16.msra.mxu0 %v1666_v23 }
  0x35   :  { %1015 = vmatprep.subr.bf16.mxu0 %v1669_v24  ;;  %1081 = vmatpush1.bf16.msra.mxu1 %v1686_v30 }
  0x36   :  { %1083 = vmatprep.subr.bf16.mxu1 %v1689_v31 }
  0x38   :  { %1017 = vmatpush1.bf16.msra.mxu0 %v1686_v30 }
  0x39   :  { %1019 = vmatprep.subr.bf16.mxu0 %v1689_v31  ;;  %1085 = vmatpush1.bf16.msra.mxu1 %v1706_v38 }
  0x3a   :  { %1087 = vmatprep.subr.bf16.mxu1 %v1709_v41 }
  0x3c   :  { %1021 = vmatpush1.bf16.msra.mxu0 %v1706_v38 }
  0x3d   :  { %1023 = vmatprep.subr.bf16.mxu0 %v1709_v41  ;;  %1089 = vmatpush1.bf16.msra.mxu1 %v1726_v48 }
  0x3e   :  { %1091 = vmatprep.subr.bf16.mxu1 %v1729_v49 }
  0x40   :  { %1025 = vmatpush1.bf16.msra.mxu0 %v1726_v48 }
  0x41   :  { %1027 = vmatprep.subr.bf16.mxu0 %v1729_v49  ;;  %1093 = vmatpush1.bf16.msra.mxu1 %v1746_v56 }
  0x42   :  { %1095 = vmatprep.subr.bf16.mxu1 %v1749_v59 }
  0x44   :  { %1029 = vmatpush1.bf16.msra.mxu0 %v1746_v56 }
  0x45   :  { %1031 = vmatprep.subr.bf16.mxu0 %v1749_v59  ;;  %1097 = vmatpush1.bf16.msra.mxu1 %v1760_v62 }
  0x46   :  { %1099 = vmatprep.subr.bf16.mxu1 %v1772_v3 }
  0x48   :  { %1033 = vmatpush1.bf16.msra.mxu0 %v1760_v62 }
  0x49   :  { %1035 = vmatprep.subr.bf16.mxu0 %v1772_v3  ;;  %1101 = vmatpush1.bf16.msra.mxu1 %v1780_v8 }
  0x4a   :  { %1167 = vmatprep.subr.bf16.mxu1 %v1467_v27 }
  0x4c   :  { %1037 = vmatpush1.bf16.msra.mxu0 %v1780_v8 }
  0x4d   :  { %1103 = vmatprep.subr.bf16.mxu0 %v1102_v13  ;;  %v1112_v13 = vpack.c.bf16 %v474_v7, %v472_v4  ;;  %v493_v4 = vld [vmem:[%s2313_s3 + $0xe8] sm:$0xff]  ;;  %v495_v7 = vld [vmem:[%s2313_s3 + $0xf8] sm:$0xff] }
  0x4e   :  { %v1130_v10 = vpack.c.bf16 %v495_v7, %v493_v4  ;;  %v511_v4 = vld [vmem:[%s2313_s3 + $0x178] sm:$0xff] }
  0xdf   :  { %v273_v28 = vpop.f32.mrb[0].mxu1 }
  0xe0   :  { %v1814_v35 = vadd.f32 %v273_v28, %v200_v21  ;;  %v275_v36 = vpop.f32.mrb[1].mxu1  ;;  %v481_v21 = vld [vmem:[%s2313_s3 + $0x88] sm:$0xff]  ;;  %v480_v28 = vld [vmem:[%s2313_s3 + $0x80] sm:$0xff] }
  0xe1   :  { %v1816_v37 = vadd.f32 %v275_v36, %v204_v22  ;;  %v483_v22 = vld [vmem:[%s2313_s3 + $0x98] sm:$0xff] }
  0xe2   :  { %v1818_v43 = vpop.f32.mrb[0].mxu0  ;;  %v349_v61 = vmul.f32 %v1814_v35, %v1814_v35  ;;  %v1118_v26 = vpack.c.bf16 %v483_v22, %v481_v21  ;;  %v487_v36 = vld [vmem:[%s2313_s3 + $0xb8] sm:$0xff]  ;;  %v1134_v22 = vpack.c.bf16 %v499_v19, %v497_v15  ;;  %v512_v19 = vld [vmem:[%s2313_s3 + $0x180] sm:$0xff] }
  0xe3   :  { %342 = vmatprep.mubr.f32.mxu0 %v1816_v37  ;;  %v350_v53 = vmul.f32 %v1816_v37, %v1816_v37  ;;  %v1829_v54 = vpop.f32.mrb[1].mxu0  ;;  %v515_v15 = vld [vmem:[%s2313_s3 + $0x198] sm:$0xff] }
  0xe4   :  { %343 = vmatmul.mubr.f32.vlgmr.msra.gmra.mrb[2].mxu0 %v1814_v35 }
  0xe5   :  { %415 = vmatprep.mubr.f32.mxu1 %v350_v53  ;;  %1105 = vmatpush1.bf16.msra.mxu0 %v1104_v42  ;;  %v1120_v42 = vpack.c.bf16 %v482_v29, %v480_v28  ;;  %v489_v53 = vld [vmem:[%s2313_s3 + $0xc8] sm:$0xff] }
  0xe6   :  { %416 = vmatmul.mubr.f32.vlgmr.msra.gmra.mrb[2].mxu1 %v349_v61  ;;  %1107 = vmatprep.subr.bf16.mxu0 %v1106_v44  ;;  %v1122_v44 = vpack.c.bf16 %v487_v36, %v485_v32  ;;  %v1126_v61 = vpack.c.bf16 %v491_v55, %v489_v53  ;;  %v501_v29 = vld [vmem:[%s2313_s3 + $0x128] sm:$0xff]  ;;  %v503_v32 = vld [vmem:[%s2313_s3 + $0x138] sm:$0xff] }
  0xe7   :  { %1169 = vmatpush1.bf16.msra.mxu1 %v1485_v33  ;;  %v1138_v36 = vpack.c.bf16 %v503_v32, %v501_v29  ;;  %v507_v53 = vld [vmem:[%s2313_s3 + $0x158] sm:$0xff]  ;;  %v516_v32 = vld [vmem:[%s2313_s3 + $0x1a0] sm:$0xff] }
  0xe8   :  { %1171 = vmatprep.subr.bf16.mxu1 %v1488_v34  ;;  %v1142_v55 = vpack.c.bf16 %v507_v53, %v505_v50  ;;  %v520_v53 = vld [vmem:[%s2313_s3 + $0x1c0] sm:$0xff] }
  0xe9   :  { %1109 = vmatpush1.bf16.msra.mxu0 %v1108_v1  ;;  %v488_v1 = vld [vmem:[%s2313_s3 + $0xc0] sm:$0xff] }
  0xea   :  { %1111 = vmatprep.subr.bf16.mxu0 %v1110_v2  ;;  %v490_v2 = vld [vmem:[%s2313_s3 + $0xd0] sm:$0xff] }
  0xeb   :  { %1173 = vmatpush1.bf16.msra.mxu1 %v1506_v39  ;;  %v1128_v9 = vpack.c.bf16 %v490_v2, %v488_v1  ;;  %v509_v2 = vld [vmem:[%s2313_s3 + $0x168] sm:$0xff] }
  0xec   :  { %1175 = vmatprep.subr.bf16.mxu1 %v1509_v40  ;;  %v1146_v7 = vpack.c.bf16 %v511_v4, %v509_v2  ;;  %v524_v4 = vld [vmem:[%s2313_s3 + $0x1e0] sm:$0xff] }
  0xed   :  { %1113 = vmatpush1.bf16.msra.mxu0 %v1112_v13  ;;  %v492_v13 = vld [vmem:[%s2313_s3 + $0xe0] sm:$0xff] }
  0xee   :  { %1115 = vmatprep.subr.bf16.mxu0 %v1114_v14  ;;  %v494_v14 = vld [vmem:[%s2313_s3 + $0xf0] sm:$0xff] }
  0xef   :  { %1177 = vmatpush1.bf16.msra.mxu1 %v1526_v45  ;;  %v1132_v21 = vpack.c.bf16 %v494_v14, %v492_v13  ;;  %v513_v14 = vld [vmem:[%s2313_s3 + $0x188] sm:$0xff] }
  0xf0   :  { %1179 = vmatprep.subr.bf16.mxu1 %v1529_v46 }
  0xf1   :  { %1117 = vmatpush1.bf16.msra.mxu0 %v1116_v25  ;;  %v496_v25 = vld [vmem:[%s2313_s3 + $0x100] sm:$0xff] }
  0xf2   :  { %1119 = vmatprep.subr.bf16.mxu0 %v1118_v26  ;;  %v498_v26 = vld [vmem:[%s2313_s3 + $0x110] sm:$0xff] }
  0xf3   :  { %1181 = vmatpush1.bf16.msra.mxu1 %v1546_v51  ;;  %v1136_v28 = vpack.c.bf16 %v498_v26, %v496_v25  ;;  %v517_v25 = vld [vmem:[%s2313_s3 + $0x1a8] sm:$0xff]  ;;  %v519_v26 = vld [vmem:[%s2313_s3 + $0x1b8] sm:$0xff] }
  0xf4   :  { %1183 = vmatprep.subr.bf16.mxu1 %v1549_v52  ;;  %v1154_v29 = vpack.c.bf16 %v519_v26, %v517_v25 }
  0xf5   :  { %1121 = vmatpush1.bf16.msra.mxu0 %v1120_v42  ;;  %v500_v42 = vld [vmem:[%s2313_s3 + $0x120] sm:$0xff] }
  0xf6   :  { %1123 = vmatprep.subr.bf16.mxu0 %v1122_v44  ;;  %v502_v44 = vld [vmem:[%s2313_s3 + $0x130] sm:$0xff] }
  0xf7   :  { %1185 = vmatpush1.bf16.msra.mxu1 %v1566_v57  ;;  %v1140_v47 = vpack.c.bf16 %v502_v44, %v500_v42  ;;  %v521_v42 = vld [vmem:[%s2313_s3 + $0x1c8] sm:$0xff]  ;;  %v523_v44 = vld [vmem:[%s2313_s3 + $0x1d8] sm:$0xff] }
  0xf8   :  { %1187 = vmatprep.subr.bf16.mxu1 %v1569_v58  ;;  %v1158_v50 = vpack.c.bf16 %v523_v44, %v521_v42  ;;  %v952_v42 = vld [vmem:[%s2314_s6 + $0x2] ss:$8 sm:$0x3] }
  0xf9   :  { %1125 = vmatpush1.bf16.msra.mxu0 %v1124_v60  ;;  %v504_v60 = vld [vmem:[%s2313_s3 + $0x140] sm:$0xff] }
  0xfa   :  { %1127 = vmatprep.subr.bf16.mxu0 %v1126_v61  ;;  %v506_v61 = vld [vmem:[%s2313_s3 + $0x150] sm:$0xff] }
  0xfb   :  { %1189 = vmatpush1.bf16.msra.mxu1 %v1586_v63  ;;  %v1144_v1 = vpack.c.bf16 %v506_v61, %v504_v60  ;;  %v525_v60 = vld [vmem:[%s2313_s3 + $0x1e8] sm:$0xff]  ;;  %v527_v61 = vld [vmem:[%s2313_s3 + $0x1f8] sm:$0xff] }
  0xfc   :  { %1191 = vmatprep.subr.bf16.mxu1 %v1589_v0  ;;  %v1162_v2 = vpack.c.bf16 %v527_v61, %v525_v60 }
  0xfd   :  { %1129 = vmatpush1.bf16.msra.mxu0 %v1128_v9  ;;  %v508_v9 = vld [vmem:[%s2313_s3 + $0x160] sm:$0xff] }
  0xfe   :  { %1131 = vmatprep.subr.bf16.mxu0 %v1130_v10  ;;  %v510_v10 = vld [vmem:[%s2313_s3 + $0x170] sm:$0xff] }
  0xff   :  { %1193 = vmatpush1.bf16.msra.mxu1 %v1606_v5  ;;  %v1148_v13 = vpack.c.bf16 %v510_v10, %v508_v9 }
 0x100   :  { %1195 = vmatprep.subr.bf16.mxu1 %v1609_v6 }
 0x101   :  { %1133 = vmatpush1.bf16.msra.mxu0 %v1132_v21  ;;  %v1150_v21 = vpack.c.bf16 %v515_v15, %v513_v14 }
 0x102   :  { %1135 = vmatprep.subr.bf16.mxu0 %v1134_v22  ;;  %v514_v22 = vld [vmem:[%s2313_s3 + $0x190] sm:$0xff] }
 0x103   :  { %1197 = vmatpush1.bf16.msra.mxu1 %v1626_v11 }
 0x104   :  { %1199 = vmatprep.subr.bf16.mxu1 %v1629_v12 }
 0x105   :  { %1137 = vmatpush1.bf16.msra.mxu0 %v1136_v28  ;;  %v1152_v28 = vpack.c.bf16 %v514_v22, %v512_v19 }
 0x106   :  { %1139 = vmatprep.subr.bf16.mxu0 %v1138_v36  ;;  %v518_v36 = vld [vmem:[%s2313_s3 + $0x1b0] sm:$0xff] }
 0x107   :  { %1201 = vmatpush1.bf16.msra.mxu1 %v1646_v17 }
 0x108   :  { %1203 = vmatprep.subr.bf16.mxu1 %v1649_v18 }
 0x109   :  { %1141 = vmatpush1.bf16.msra.mxu0 %v1140_v47  ;;  %v1156_v47 = vpack.c.bf16 %v518_v36, %v516_v32  ;;  %v951_v36 = vld [vmem:[%s2314_s6 + $0x1] ss:$8 sm:$0x3] }
 0x10a   :  { %1143 = vmatprep.subr.bf16.mxu0 %v1142_v55  ;;  %v522_v55 = vld [vmem:[%s2313_s3 + $0x1d0] sm:$0xff]  ;;  %v440_v44 = vrot.slane %v951_v36, %v1798_v20 }
 0x10b   :  { %1205 = vmatpush1.bf16.msra.mxu1 %v1666_v23 }
 0x10c   :  { %1207 = vmatprep.subr.bf16.mxu1 %v1669_v24 }
 0x10d   :  { %1145 = vmatpush1.bf16.msra.mxu0 %v1144_v1  ;;  %v1160_v1 = vpack.c.bf16 %v522_v55, %v520_v53  ;;  %v453_v55 = vrot.slane %v952_v42, %v1793_v16 }
 0x10e   :  { %1147 = vmatprep.subr.bf16.mxu0 %v1146_v7  ;;  %v526_v7 = vld [vmem:[%s2313_s3 + $0x1f0] sm:$0xff] }
 0x10f   :  { %1209 = vmatpush1.bf16.msra.mxu1 %v1686_v30  ;;  %v1164_v9 = vpack.c.bf16 %v526_v7, %v524_v4 }
 0x110   :  { %1211 = vmatprep.subr.bf16.mxu1 %v1689_v31 }
 0x111   :  { %1149 = vmatpush1.bf16.msra.mxu0 %v1148_v13 }
 0x112   :  { %1151 = vmatprep.subr.bf16.mxu0 %v1150_v21 }
 0x113   :  { %1213 = vmatpush1.bf16.msra.mxu1 %v1706_v38 }
 0x114   :  { %1215 = vmatprep.subr.bf16.mxu1 %v1709_v41 }
 0x115   :  { %1153 = vmatpush1.bf16.msra.mxu0 %v1152_v28 }
 0x116   :  { %1155 = vmatprep.subr.bf16.mxu0 %v1154_v29 }
 0x117   :  { %1217 = vmatpush1.bf16.msra.mxu1 %v1726_v48 }
 0x118   :  { %1219 = vmatprep.subr.bf16.mxu1 %v1729_v49 }
 0x119   :  { %1157 = vmatpush1.bf16.msra.mxu0 %v1156_v47 }
 0x11a   :  { %1159 = vmatprep.subr.bf16.mxu0 %v1158_v50 }
 0x11b   :  { %1221 = vmatpush1.bf16.msra.mxu1 %v1746_v56 }
 0x11c   :  { %1223 = vmatprep.subr.bf16.mxu1 %v1749_v59 }
 0x11d   :  { %1161 = vmatpush1.bf16.msra.mxu0 %v1160_v1 }
 0x11e   :  { %1163 = vmatprep.subr.bf16.mxu0 %v1162_v2  ;;  %v457_v2 = vrot.slane %v952_v42, %v1798_v20  ;;  %v823_v42 = vld [vmem:[%s2315_s4 + $0xc8] sm:$0xff] }
 0x11f   :  { %1225 = vmatpush1.bf16.msra.mxu1 %v1760_v62 }
 0x120   :  { %1227 = vmatprep.subr.bf16.mxu1 %v1772_v3 }
 0x121   :  { %1165 = vmatpush1.bf16.msra.mxu0 %v1164_v9 }
 0x122   :  { %1231 = vmatprep.subr.bf16.mxu0 %v1467_v27  ;;  %v436_v27 = vrot.slane %v951_v36, %v1793_v16  ;;  %v818_v36 = vld [vmem:[%s2315_s4 + $0xa0] sm:$0xff] }
 0x123   :  { %1229 = vmatpush1.bf16.msra.mxu1 %v1780_v8 }
 0x1b7   :  { %v344_v10 = vpop.f32.mrb[2].mxu0 }
 0x1b8   :  { %v422_v13 = vmul.f32 %v344_v10, %v344_v10  ;;  %v346_v14 = vpop.f32.mrb[3].mxu0  ;;  %v445_v53 = vsub.f32 %v1814_v35, %v344_v10  ;;  %v812_v35 = vld [vmem:[%s2315_s4 + $0x70] sm:$0xff]  ;;  %v817_v10 = vld [vmem:[%s2315_s4 + $0x98] sm:$0xff] }
 0x1b9   :  { %v423_v15 = vmul.f32 %v346_v14, %v346_v14  ;;  %v417_v19 = vpop.f32.mrb[2].mxu1  ;;  %v446_v61 = vsub.f32 %v1816_v37, %v346_v14  ;;  %v815_v37 = vld [vmem:[%s2315_s4 + $0x88] sm:$0xff] }
 0x1ba   :  { %v424_v21 = vsub.f32 %v417_v19, %v422_v13  ;;  %v419_v22 = vpop.f32.mrb[3].mxu1 }
 0x1bb   :  { %v425_v25 = vsub.f32 %v419_v22, %v423_v15  ;;  %v814_v22 = vld [vmem:[%s2315_s4 + $0x80] sm:$0xff] }
 0x1bc   :  { %v426_v26 = vmax.f32 %v424_v21, 0.0  ;;  %v1310_v21 = vpack.c.bf16 %v817_v10, %v815_v37  ;;  %v850_v37 = vld [vmem:[%s2315_s4 + $0x1a0] sm:$0xff]  ;;  %v852_v10 = vld [vmem:[%s2315_s4 + $0x1b0] sm:$0xff] }
 0x1bd   :  { %v427_v28 = vmax.f32 %v425_v25, 0.0  ;;  %v816_v25 = vld [vmem:[%s2315_s4 + $0x90] sm:$0xff] }
 0x1be   :  { %v428_v29 = vadd.f32 1e-05, %v426_v26  ;;  %v819_v26 = vld [vmem:[%s2315_s4 + $0xa8] sm:$0xff] }
 0x1bf   :  { %v429_v32 = vadd.f32 1e-05, %v427_v28  ;;  %v821_v28 = vld [vmem:[%s2315_s4 + $0xb8] sm:$0xff] }
 0x1c0   :  { %1359 = vrsqrt.f32 %v428_v29  ;;  %v1312_v29 = vpack.c.bf16 %v816_v25, %v814_v22  ;;  %v857_v22 = vld [vmem:[%s2315_s4 + $0x1d8] sm:$0xff]  ;;  %v854_v25 = vld [vmem:[%s2315_s4 + $0x1c0] sm:$0xff] }
 0x1c1   :  { %1361 = vrsqrt.f32 %v429_v32  ;;  %v1314_v32 = vpack.c.bf16 %v821_v28, %v819_v26  ;;  %v856_v28 = vld [vmem:[%s2315_s4 + $0x1d0] sm:$0xff] }
 0x1ca   :  { %v1360_v47 = vpop.eup %1359 }
 0x1cb   :  { %v1362_v50 = vpop.eup %1361  ;;  %v443_v60 = vmul.f32 %v1360_v47, %v436_v27  ;;  %v820_v27 = vld [vmem:[%s2315_s4 + $0xb0] sm:$0xff] }
 0x1cc   :  { %v444_v1 = vmul.f32 %v1362_v50, %v440_v44  ;;  %v825_v44 = vld [vmem:[%s2315_s4 + $0xd8] sm:$0xff]  ;;  %v1316_v47 = vpack.c.bf16 %v820_v27, %v818_v36  ;;  %v1352_v36 = vpack.c.bf16 %v856_v28, %v854_v25 }
 0x1cd   :  { %v447_v4 = vmul.f32 %v445_v53, %v443_v60  ;;  %v1318_v50 = vpack.c.bf16 %v825_v44, %v823_v42  ;;  %v822_v53 = vld [vmem:[%s2315_s4 + $0xc0] sm:$0xff]  ;;  %v827_v60 = vld [vmem:[%s2315_s4 + $0xe8] sm:$0xff]  ;;  %v860_v44 = vld [vmem:[%s2315_s4 + $0x1f0] sm:$0xff] }
 0x1ce   :  { %v448_v7 = vmul.f32 %v446_v61, %v444_v1  ;;  %v829_v61 = vld [vmem:[%s2315_s4 + $0xf8] sm:$0xff]  ;;  %v858_v42 = vld [vmem:[%s2315_s4 + $0x1e0] sm:$0xff] }
 0x1cf   :  { %v460_v9 = vadd.f32 %v453_v55, %v447_v4  ;;  %v824_v55 = vld [vmem:[%s2315_s4 + $0xd0] sm:$0xff]  ;;  %v826_v4 = vld [vmem:[%s2315_s4 + $0xe0] sm:$0xff] }
 0x1d0   :  { %v461_v13 = vadd.f32 %v457_v2, %v448_v7  ;;  %v1320_v1 = vpack.c.bf16 %v824_v55, %v822_v53  ;;  %v1322_v2 = vpack.c.bf16 %v829_v61, %v827_v60  ;;  %v828_v7 = vld [vmem:[%s2315_s4 + $0xf0] sm:$0xff] }
 0x1d1   :  { %v462_v19 = vmax.f32 %v460_v9, 0.0  ;;  %v1324_v9 = vpack.c.bf16 %v828_v7, %v826_v4 }
 0x1d2   :  { %v463_v15 = vmax.f32 %v461_v13, 0.0  ;;  %v831_v13 = vld [vmem:[%s2315_s4 + $0x108] sm:$0xff] }
 0x1d4   :  { %603 = vmatprep.mubr.f32.mxu0 %v463_v15  ;;  %v833_v15 = vld [vmem:[%s2315_s4 + $0x118] sm:$0xff] }
 0x1d5   :  { %604 = vmatmul.mubr.f32.vlgmr.msra.gmra.mrb[4].mxu0 %v462_v19  ;;  %v1326_v19 = vpack.c.bf16 %v833_v15, %v831_v13 }
 0x1d6   :  { %1233 = vmatpush1.bf16.msra.mxu0 %v1485_v33  ;;  %v799_v33 = vld [vmem:[%s2315_s4 + $0x8] sm:$0xff] }
 0x1d7   :  { %1235 = vmatprep.subr.bf16.mxu0 %v1488_v34  ;;  %v801_v34 = vld [vmem:[%s2315_s4 + $0x18] sm:$0xff] }
 0x1da   :  { %1237 = vmatpush1.bf16.msra.mxu0 %v1506_v39  ;;  %v1294_v39 = vpack.c.bf16 %v801_v34, %v799_v33  ;;  %v830_v33 = vld [vmem:[%s2315_s4 + $0x100] sm:$0xff]  ;;  %v832_v34 = vld [vmem:[%s2315_s4 + $0x110] sm:$0xff] }
 0x1db   :  { %1239 = vmatprep.subr.bf16.mxu0 %v1509_v40  ;;  %v953_v40 = vld [vmem:[%s2314_s6 + $0x3] ss:$8 sm:$0x3] }
 0x1dc   :  { %1295 = vmatprep.subr.bf16.mxu1 %v1294_v39  ;;  %v1328_v39 = vpack.c.bf16 %v832_v34, %v830_v33  ;;  %v955_v34 = vld [vmem:[%s2314_s6 + $0x5] ss:$8 sm:$0x3] }
 0x1de   :  { %1241 = vmatpush1.bf16.msra.mxu0 %v1526_v45  ;;  %v532_v45 = vrot.slane %v953_v40, %v1793_v16 }
 0x1df   :  { %1243 = vmatprep.subr.bf16.mxu0 %v1529_v46  ;;  %v536_v46 = vrot.slane %v953_v40, %v1798_v20  ;;  %v835_v40 = vld [vmem:[%s2315_s4 + $0x128] sm:$0xff] }
 0x1e2   :  { %1245 = vmatpush1.bf16.msra.mxu0 %v1546_v51  ;;  %v798_v51 = vld [vmem:[%s2315_s4] sm:$0xff] }
 0x1e3   :  { %1247 = vmatprep.subr.bf16.mxu0 %v1549_v52  ;;  %v800_v52 = vld [vmem:[%s2315_s4 + $0x10] sm:$0xff] }
 0x1e6   :  { %1249 = vmatpush1.bf16.msra.mxu0 %v1566_v57 }
 0x1e7   :  { %1251 = vmatprep.subr.bf16.mxu0 %v1569_v58  ;;  %v803_v58 = vld [vmem:[%s2315_s4 + $0x28] sm:$0xff] }
 0x1ea   :  { %1253 = vmatpush1.bf16.msra.mxu0 %v1586_v63  ;;  %v805_v63 = vld [vmem:[%s2315_s4 + $0x38] sm:$0xff] }
 0x1eb   :  { %1255 = vmatprep.subr.bf16.mxu0 %v1589_v0 }
 0x1ee   :  { %1257 = vmatpush1.bf16.msra.mxu0 %v1606_v5 }
 0x1ef   :  { %1259 = vmatprep.subr.bf16.mxu0 %v1609_v6 }
 0x1f2   :  { %1261 = vmatpush1.bf16.msra.mxu0 %v1626_v11  ;;  %v1296_v11 = vpack.c.bf16 %v800_v52, %v798_v51  ;;  %v834_v51 = vld [vmem:[%s2315_s4 + $0x120] sm:$0xff]  ;;  %v836_v52 = vld [vmem:[%s2315_s4 + $0x130] sm:$0xff] }
 0x1f3   :  { %1263 = vmatprep.subr.bf16.mxu0 %v1629_v12  ;;  %v1298_v12 = vpack.c.bf16 %v805_v63, %v803_v58  ;;  %v839_v58 = vld [vmem:[%s2315_s4 + $0x148] sm:$0xff]  ;;  %v841_v63 = vld [vmem:[%s2315_s4 + $0x158] sm:$0xff] }
 0x1f6   :  { %1265 = vmatpush1.bf16.msra.mxu0 %v1646_v17  ;;  %v802_v17 = vld [vmem:[%s2315_s4 + $0x20] sm:$0xff] }
 0x1f7   :  { %1267 = vmatprep.subr.bf16.mxu0 %v1649_v18  ;;  %v804_v18 = vld [vmem:[%s2315_s4 + $0x30] sm:$0xff] }
 0x1fa   :  { %1269 = vmatpush1.bf16.msra.mxu0 %v1666_v23 }
 0x1fb   :  { %1271 = vmatprep.subr.bf16.mxu0 %v1669_v24  ;;  %v807_v24 = vld [vmem:[%s2315_s4 + $0x48] sm:$0xff] }
 0x1fe   :  { %1273 = vmatpush1.bf16.msra.mxu0 %v1686_v30  ;;  %v809_v30 = vld [vmem:[%s2315_s4 + $0x58] sm:$0xff] }
 0x1ff   :  { %1275 = vmatprep.subr.bf16.mxu0 %v1689_v31 }
 0x202   :  { %1277 = vmatpush1.bf16.msra.mxu0 %v1706_v38  ;;  %v1300_v38 = vpack.c.bf16 %v804_v18, %v802_v17  ;;  %v843_v18 = vld [vmem:[%s2315_s4 + $0x168] sm:$0xff] }
 0x203   :  { %1279 = vmatprep.subr.bf16.mxu0 %v1709_v41  ;;  %v1302_v41 = vpack.c.bf16 %v809_v30, %v807_v24  ;;  %v842_v30 = vld [vmem:[%s2315_s4 + $0x160] sm:$0xff] }
 0x206   :  { %1281 = vmatpush1.bf16.msra.mxu0 %v1726_v48  ;;  %v806_v48 = vld [vmem:[%s2315_s4 + $0x40] sm:$0xff] }
 0x207   :  { %1283 = vmatprep.subr.bf16.mxu0 %v1729_v49  ;;  %v808_v49 = vld [vmem:[%s2315_s4 + $0x50] sm:$0xff] }
 0x20a   :  { %1285 = vmatpush1.bf16.msra.mxu0 %v1746_v56  ;;  %v811_v56 = vld [vmem:[%s2315_s4 + $0x68] sm:$0xff] }
 0x20b   :  { %1287 = vmatprep.subr.bf16.mxu0 %v1749_v59  ;;  %v813_v59 = vld [vmem:[%s2315_s4 + $0x78] sm:$0xff] }
 0x20e   :  { %1289 = vmatpush1.bf16.msra.mxu0 %v1760_v62  ;;  %v1304_v62 = vpack.c.bf16 %v808_v49, %v806_v48  ;;  %v849_v48 = vld [vmem:[%s2315_s4 + $0x198] sm:$0xff] }
 0x20f   :  { %1291 = vmatprep.subr.bf16.mxu0 %v1772_v3  ;;  %v1306_v3 = vpack.c.bf16 %v813_v59, %v811_v56  ;;  %v846_v56 = vld [vmem:[%s2315_s4 + $0x180] sm:$0xff]  ;;  %v848_v59 = vld [vmem:[%s2315_s4 + $0x190] sm:$0xff] }
 0x212   :  { %1293 = vmatpush1.bf16.msra.mxu0 %v1780_v8  ;;  %v810_v8 = vld [vmem:[%s2315_s4 + $0x60] sm:$0xff] }
 0x213   :  { %v1308_v14 = vpack.c.bf16 %v812_v35, %v810_v8  ;;  %v853_v8 = vld [vmem:[%s2315_s4 + $0x1b8] sm:$0xff] }
 0x2a8   :  { %v605_v57 = vpop.f32.mrb[4].mxu0 }
 0x2a9   :  { %v2100_v0 = vadd.f32 %v605_v57, %v532_v45  ;;  %v607_v5 = vpop.f32.mrb[5].mxu0  ;;  %v837_v45 = vld [vmem:[%s2315_s4 + $0x138] sm:$0xff]  ;;  %v1332_v57 = vpack.c.bf16 %v836_v52, %v834_v51  ;;  %v785_v52 = vrot.slane %v955_v34, %v1793_v16 }
 0x2aa   :  { %v2102_v6 = vadd.f32 %v607_v5, %v536_v46  ;;  %v1330_v46 = vpack.c.bf16 %v837_v45, %v835_v40  ;;  %v1334_v5 = vpack.c.bf16 %v841_v63, %v839_v58  ;;  %v789_v63 = vrot.slane %v955_v34, %v1798_v20 }
 0x2ab   :  { %v681_v31 = vmul.f32 %v2100_v0, %v2100_v0 }
 0x2ac   :  { %674 = vmatprep.mubr.f32.mxu1 %v2102_v6  ;;  %v682_v23 = vmul.f32 %v2102_v6, %v2102_v6 }
 0x2ad   :  { %675 = vmatmul.mubr.f32.vlgmr.msra.gmra.mrb[4].mxu1 %v2100_v0 }
 0x2ae   :  { %747 = vmatprep.mubr.f32.mxu0 %v682_v23  ;;  %1297 = vmatpush1.bf16.msra.mxu1 %v1296_v11  ;;  %v838_v11 = vld [vmem:[%s2315_s4 + $0x140] sm:$0xff]  ;;  %v845_v23 = vld [vmem:[%s2315_s4 + $0x178] sm:$0xff] }
 0x2af   :  { %748 = vmatmul.mubr.f32.vlgmr.msra.gmra.mrb[6].mxu0 %v681_v31  ;;  %1299 = vmatprep.subr.bf16.mxu1 %v1298_v12  ;;  %v840_v12 = vld [vmem:[%s2315_s4 + $0x150] sm:$0xff]  ;;  %v1338_v24 = vpack.c.bf16 %v845_v23, %v843_v18 }
 0x2b0   :  { %v1336_v17 = vpack.c.bf16 %v840_v12, %v838_v11  ;;  %v844_v31 = vld [vmem:[%s2315_s4 + $0x170] sm:$0xff] }
 0x2b2   :  { %1301 = vmatpush1.bf16.msra.mxu1 %v1300_v38  ;;  %v1340_v38 = vpack.c.bf16 %v844_v31, %v842_v30 }
 0x2b3   :  { %1303 = vmatprep.subr.bf16.mxu1 %v1302_v41  ;;  %v847_v41 = vld [vmem:[%s2315_s4 + $0x188] sm:$0xff] }
 0x2b4   :  { %v1342_v49 = vpack.c.bf16 %v849_v48, %v847_v41 }
 0x2b6   :  { %1305 = vmatpush1.bf16.msra.mxu1 %v1304_v62  ;;  %v1344_v62 = vpack.c.bf16 %v848_v59, %v846_v56 }
 0x2b7   :  { %1307 = vmatprep.subr.bf16.mxu1 %v1306_v3  ;;  %v851_v3 = vld [vmem:[%s2315_s4 + $0x1a8] sm:$0xff] }
 0x2b8   :  { %v1346_v35 = vpack.c.bf16 %v853_v8, %v851_v3 }
 0x2ba   :  { %1309 = vmatpush1.bf16.msra.mxu1 %v1308_v14  ;;  %v1348_v14 = vpack.c.bf16 %v852_v10, %v850_v37 }
 0x2bb   :  { %1311 = vmatprep.subr.bf16.mxu1 %v1310_v21  ;;  %v855_v21 = vld [vmem:[%s2315_s4 + $0x1c8] sm:$0xff] }
 0x2bc   :  { %v1350_v26 = vpack.c.bf16 %v857_v22, %v855_v21 }
 0x2be   :  { %1313 = vmatpush1.bf16.msra.mxu1 %v1312_v29  ;;  %v859_v29 = vld [vmem:[%s2315_s4 + $0x1e8] sm:$0xff] }
 0x2bf   :  { %1315 = vmatprep.subr.bf16.mxu1 %v1314_v32  ;;  %v861_v32 = vld [vmem:[%s2315_s4 + $0x1f8] sm:$0xff] }
 0x2c0   :  { %v1354_v27 = vpack.c.bf16 %v861_v32, %v859_v29 }
 0x2c2   :  { %1317 = vmatpush1.bf16.msra.mxu1 %v1316_v47  ;;  %v1356_v47 = vpack.c.bf16 %v860_v44, %v858_v42 }
 0x2c3   :  { %1319 = vmatprep.subr.bf16.mxu1 %v1318_v50 }
 0x2c6   :  { %1321 = vmatpush1.bf16.msra.mxu1 %v1320_v1 }
 0x2c7   :  { %1323 = vmatprep.subr.bf16.mxu1 %v1322_v2 }
 0x2ca   :  { %1325 = vmatpush1.bf16.msra.mxu1 %v1324_v9 }
 0x2cb   :  { %1327 = vmatprep.subr.bf16.mxu1 %v1326_v19  ;;  %v954_v19 = vld [vmem:[%s2314_s6 + $0x4] ss:$8 sm:$0x3] }
 0x2cc   :  { %v768_v33 = vrot.slane %v954_v19, %v1793_v16 }
 0x2ce   :  { %1329 = vmatpush1.bf16.msra.mxu1 %v1328_v39  ;;  %v772_v39 = vrot.slane %v954_v19, %v1798_v20 }
 0x2cf   :  { %1331 = vmatprep.subr.bf16.mxu1 %v1330_v46 }
 0x2d2   :  { %1333 = vmatpush1.bf16.msra.mxu1 %v1332_v57 }
 0x2d3   :  { %1335 = vmatprep.subr.bf16.mxu1 %v1334_v5 }
 0x2d6   :  { %1337 = vmatpush1.bf16.msra.mxu1 %v1336_v17 }
 0x2d7   :  { %1339 = vmatprep.subr.bf16.mxu1 %v1338_v24 }
 0x2da   :  { %1341 = vmatpush1.bf16.msra.mxu1 %v1340_v38 }
 0x2db   :  { %1343 = vmatprep.subr.bf16.mxu1 %v1342_v49 }
 0x2de   :  { %1345 = vmatpush1.bf16.msra.mxu1 %v1344_v62 }
 0x2df   :  { %1347 = vmatprep.subr.bf16.mxu1 %v1346_v35 }
 0x2e2   :  { %1349 = vmatpush1.bf16.msra.mxu1 %v1348_v14 }
 0x2e3   :  { %1351 = vmatprep.subr.bf16.mxu1 %v1350_v26 }
 0x2e6   :  { %1353 = vmatpush1.bf16.msra.mxu1 %v1352_v36 }
 0x2e7   :  { %1355 = vmatprep.subr.bf16.mxu1 %v1354_v27 }
 0x2ea   :  { %1357 = vmatpush1.bf16.msra.mxu1 %v1356_v47 }
 0x380   :  { %v676_v50 = vpop.f32.mrb[4].mxu1 }
 0x381   :  { %v754_v53 = vmul.f32 %v676_v50, %v676_v50  ;;  %v678_v55 = vpop.f32.mrb[5].mxu1  ;;  %v777_v46 = vsub.f32 %v2100_v0, %v676_v50  ;;  %v862_v0 = vld [vmem:[%s2316_s7] sm:$0x3] }
 0x382   :  { %v755_v60 = vmul.f32 %v678_v55, %v678_v55  ;;  %v749_v61 = vpop.f32.mrb[6].mxu0  ;;  %v778_v57 = vsub.f32 %v2102_v6, %v678_v55  ;;  %v867_v6 = vrot.slane %v862_v0, %v1793_v16  ;;  %v871_v31 = vrot.slane %v862_v0, %v1798_v20 }
 0x383   :  { %v756_v1 = vsub.f32 %v749_v61, %v754_v53  ;;  %v751_v2 = vpop.f32.mrb[7].mxu0 }
 0x384   :  { %v757_v4 = vsub.f32 %v751_v2, %v755_v60 }
 0x385   :  { %v758_v7 = vmax.f32 %v756_v1, 0.0 }
 0x386   :  { %v759_v9 = vmax.f32 %v757_v4, 0.0 }
 0x387   :  { %v760_v13 = vadd.f32 1e-05, %v758_v7 }
 0x388   :  { %v761_v15 = vadd.f32 1e-05, %v759_v9 }
 0x389   :  { %1363 = vrsqrt.f32 %v760_v13 }
 0x38a   :  { %1365 = vrsqrt.f32 %v761_v15 }
 0x393   :  { %v1364_v40 = vpop.eup %1363 }
 0x394   :  { %v1366_v45 = vpop.eup %1365  ;;  %v775_v51 = vmul.f32 %v1364_v40, %v768_v33 }
 0x395   :  { %v776_v58 = vmul.f32 %v1366_v45, %v772_v39 }
 0x396   :  { %v779_v5 = vmul.f32 %v777_v46, %v775_v51 }
 0x397   :  { %v780_v11 = vmul.f32 %v778_v57, %v776_v58 }
 0x398   :  { %v792_v12 = vadd.f32 %v785_v52, %v779_v5 }
 0x399   :  { %v793_v17 = vadd.f32 %v789_v63, %v780_v11 }
 0x39a   :  { %v794_v18 = vadd.f32 %v792_v12, %v1818_v43 }
 0x39b   :  { %v795_v23 = vadd.f32 %v793_v17, %v1829_v54 }
 0x39c   :  { %v796_v30 = vmax.f32 %v794_v18, 0.0 }
 0x39d   :  { %v797_v24 = vmax.f32 %v795_v23, 0.0 }
 0x39f   :  { %938 = vmatprep.mubr.f32.mxu1 %v797_v24 }
 0x3a0   :  { %939 = vmatmul.mubr.f32.vlgmr.msra.gmra.mrb[6].mxu1 %v796_v30 }
 0x473   :  { %v940_v38 = vpop.f32.mrb[6].mxu1 }
 0x474   :  { %v941_v41 = vadd.f32 %v940_v38, %v867_v6  ;;  %v942_v48 = vpop.f32.mrb[7].mxu1 }
 0x475   :  { %v943_v49 = vadd.f32 %v942_v48, %v871_v31 }
 0x476   :  { %945 = vst [vmem:[%s2317_s8] sm:$0xff] %v941_v41 }
 0x477   :  { %946 = vst [vmem:[%s2317_s8 + $0x8] sm:$0xff] %v943_v49 }

</bundles_post_ra>
